<compile_context>
chip_gen: v7x
topology: tpu7x:2x2x1
jax: 0.10.0
libtpu: 0.0.40
codegen_flags: <defaults>
</compile_context>

<pallas_src>
import functools
import math

import jax
import jax.numpy as jnp
from jax.experimental import pallas as pl
from jax.experimental.pallas import tpu as pltpu

_NEG_BIG = -1.0e30  # "minus infinity" sentinel that stays finite under f32 math


def _round_up(x, m):
    return ((x + m - 1) // m) * m


def _marginal_cos(cos_t, c1, c2, c3):
    """cos(c1 * acos(x) + c2) - c3 on a small (TILE_N, 1) vector."""
    cos_t = jnp.clip(cos_t, -1.0, 1.0)
    if c1 == 1.0:
        # cos(acos(x) + c2) = x*cos(c2) - sqrt(1 - x^2)*sin(c2): exact identity,
        # avoids an acos transcendental (acos is not in the EUP set).
        sin_t = jnp.sqrt(jnp.maximum(1.0 - cos_t * cos_t, 0.0))
        return cos_t * math.cos(c2) - sin_t * math.sin(c2) - c3
    # TODO(synk): non-unit c1 relies on jnp.arccos lowering in Mosaic; only
    # TILE_N values are touched, but guard/validate before shipping c1 != 1.
    return jnp.cos(c1 * jnp.arccos(cos_t) + c2) - c3


def _rec_loss_kernel(cos_ref, label_ref, out_ref, m_sc, l_sc, t_sc, *,
                     c1, c2, c3, radius, n_total, c_total,
                     tile_n, tile_c, mask_cols):
    """Streaming cross entropy over margin-modified cosine logits."""
    i = pl.program_id(0)
    j = pl.program_id(1)

    @pl.when(j == 0)
    def _init():
        m_sc[...] = jnp.full_like(m_sc, _NEG_BIG)
        l_sc[...] = jnp.zeros_like(l_sc)
        t_sc[...] = jnp.full_like(t_sc, -2.0)

    cos = cos_ref[...].astype(jnp.float32)                    # (TILE_N, TILE_C)
    lab = label_ref[...]                                      # (TILE_N, 1) i32

    class_ids = j * tile_c + jax.lax.broadcasted_iota(jnp.int32, cos.shape, 1)
    is_target = class_ids == lab                              # boolean "one-hot"

    # per-row target cosine: at most one hit across all class tiles
    t_sc[...] = jnp.maximum(
        t_sc[...],
        jnp.max(jnp.where(is_target, cos, -2.0), axis=-1, keepdims=True))

    # raw scaled logits; padded columns of a ragged last class tile are masked
    s = cos * radius
    if mask_cols:
        s = jnp.where(class_ids < c_total, s, _NEG_BIG)

    # flash-style running logsumexp over the raw logits
    m_prev = m_sc[...]
    m_new = jnp.maximum(m_prev, jnp.max(s, axis=-1, keepdims=True))
    l_sc[...] = (l_sc[...] * jnp.exp(m_prev - m_new)
                 + jnp.sum(jnp.exp(s - m_new), axis=-1, keepdims=True))
    m_sc[...] = m_new

    @pl.when(j == pl.num_programs(1) - 1)
    def _finalize():
        target_cos = t_sc[...]
        marginal = _marginal_cos(target_cos, c1, c2, c3)       # (TILE_N, 1)
        t_logit = target_cos * radius                          # raw target logit
        m_logit = marginal * radius                            # modified target logit
        # stabilizing max MUST include the modified target logit
        m_fin = jnp.maximum(m_sc[...], m_logit)
        l_fin = (l_sc[...] * jnp.exp(m_sc[...] - m_fin)
                 - jnp.exp(t_logit - m_fin)
                 + jnp.exp(m_logit - m_fin))
        l_fin = jnp.maximum(l_fin, 1e-30)                      # guard cancellation
        per_row = jnp.log(l_fin) + m_fin - m_logit             # lse - target logit

        # mask padded rows of a ragged last batch tile BEFORE the row sum
        row_ids = i * tile_n + jax.lax.broadcasted_iota(jnp.int32, (tile_n, 1), 0)
        per_row = jnp.where(row_ids < n_total, per_row, 0.0)

        partial = jnp.sum(per_row, axis=0, keepdims=True)      # (1, 1)
        # lane-dense partial-loss slab; wrapper reads [:, 0, 0]
        out_ref[...] = jnp.broadcast_to(partial.reshape(1, 1, 1), out_ref.shape)


def _choose_tiles(n, c, itemsize, sub, input_budget, vmem_limit):
    """Pick (tile_n, tile_c): stream ~input_budget bytes per grid step while the
    double-buffered input block + ~5 f32 full-tile temporaries + the lane-padded
    (tile_n,128) label buffers stay well inside the scoped-VMEM limit."""
    n_pad = max(sub, _round_up(n, sub))
    vmem_work = vmem_limit // 2                  # ~2x headroom for Mosaic scratch
    per_row_fullc = c * (2 * itemsize + 5 * 4) + 2 * 128 * 4   # + label lanes

    rows_vmem = vmem_work // per_row_fullc
    rows_dma = input_budget // max(1, c * itemsize)
    if rows_vmem >= sub and rows_dma >= sub:
        # full-C slab per step: single class tile; the streaming LSE degenerates
        # to a plain row-wise logsumexp.
        tile_c = c
        tile_n = (min(rows_vmem, rows_dma) // sub) * sub
    else:
        # large-C: also tile the class axis; per-row accumulators stay resident
        # in VMEM scratch across the (last, 'arbitrary') class grid axis.
        tile_n = min(n_pad, 8 * sub)
        per_col = tile_n * (2 * itemsize + 5 * 4)
        cols = min(vmem_work // per_col, input_budget // (tile_n * itemsize))
        tile_c = max(128, (cols // 128) * 128)
        if tile_c >= c:
            tile_c = c

    tile_n = max(sub, min(tile_n, n_pad))
    # keep >= ~8 batch-axis grid steps when N allows it: amortizes the ~0.35us
    # per-step overhead, keeps the DMA pipeline deep, and gives each v7x
    # TensorCore >= 4 steps of the 'parallel' axis.
    tile_n = min(tile_n, max(sub, _round_up(pl.cdiv(n, 8), sub)))
    return tile_n, tile_c


def rec_marginal_cos_loss(cos_distance, label, hypersphere_radius=8,
                          coefficients=(1.0, 0.0, 0.0),
                          tile_n=None, tile_c=None):
    """cos_distance: (N, C) float, label: (N,) int. Returns scalar mean loss."""
    n, c = cos_distance.shape
    label2d = label.astype(jnp.int32).reshape(n, 1)
    c1, c2, c3 = (float(x) for x in coefficients)
    itemsize = jnp.dtype(cos_distance.dtype).itemsize
    sub = {4: 8, 2: 16, 1: 32}.get(itemsize, 8)   # sublane multiple per dtype

    # ---- per-chip budgets ---------------------------------------------------
    # v5e/v6e: 128 MiB VMEM per TC -> bigger streamed tiles; v7x: 64 MiB -> cap.
    try:
        vmem_cap = int(pltpu.get_tpu_info().vmem_capacity_bytes)
    except Exception:
        vmem_cap = 64 * 1024 * 1024
    if vmem_cap >= 96 * 1024 * 1024:              # v5e / v6e
        input_budget = 8 * 1024 * 1024
        vmem_limit = 64 * 1024 * 1024
    else:                                         # v7x
        input_budget = 4 * 1024 * 1024
        vmem_limit = 48 * 1024 * 1024

    auto_tn, auto_tc = _choose_tiles(n, c, itemsize, sub, input_budget, vmem_limit)
    tile_n = auto_tn if tile_n is None else max(sub, _round_up(int(tile_n), sub))
    if tile_c is None:
        tile_c = auto_tc
    elif int(tile_c) >= c:
        tile_c = c
    else:
        tile_c = max(128, _round_up(int(tile_c), 128))

    num_n_tiles = pl.cdiv(n, tile_n)
    num_c_tiles = pl.cdiv(c, tile_c)
    mask_cols = (c % tile_c) != 0

    kernel = functools.partial(
        _rec_loss_kernel, c1=c1, c2=c2, c3=c3,
        radius=float(hypersphere_radius), n_total=n, c_total=c,
        tile_n=tile_n, tile_c=tile_c, mask_cols=mask_cols)

    # advisory estimate: the kernel streams N*C once and writes tiny partial slabs
    cost = pl.CostEstimate(
        flops=8 * n * c,
        transcendentals=n * c,
        bytes_accessed=n * c * itemsize + n * 4 + num_n_tiles * 8 * 128 * 4)

    partials = pl.pallas_call(
        kernel,
        out_shape=jax.ShapeDtypeStruct((num_n_tiles, 8, 128), jnp.float32),
        grid=(num_n_tiles, num_c_tiles),
        in_specs=[
            pl.BlockSpec((tile_n, tile_c), lambda i, j: (i, j)),
            pl.BlockSpec((tile_n, 1), lambda i, j: (i, 0)),
        ],
        out_specs=pl.BlockSpec((1, 8, 128), lambda i, j: (i, 0, 0)),
        scratch_shapes=[pltpu.VMEM((tile_n, 1), jnp.float32)] * 3,
        compiler_params=pltpu.CompilerParams(
            dimension_semantics=("parallel", "arbitrary"),
            vmem_limit_bytes=vmem_limit),
        cost_estimate=cost,
    )(cos_distance, label2d)

    return jnp.sum(partials[:, 0, 0]) / n


def _reference(cos_distance, label, radius, cs):
    """Pure-JAX reference mirroring the PyTorch forward."""
    n, c = cos_distance.shape
    onehot = jax.nn.one_hot(label, c, dtype=jnp.float32)
    x = cos_distance.astype(jnp.float32)
    marginal = jnp.cos(cs[0] * jnp.arccos(x) + cs[1]) - cs[2]
    logits = (marginal * onehot + x * (1 - onehot)) * radius
    logp = jax.nn.log_softmax(logits, axis=-1)
    return -jnp.mean(jnp.sum(logp * onehot, axis=-1))


if __name__ == "__main__":
    RADIUS = 8
    LEN_EMBEDDING = 32          # not used in forward (documents module config)
    COEFFS = (1.0, 0.35, 0.0)   # ArcFace-style additive angular margin

    def make_inputs(key, n, c):
        k1, k2 = jax.random.split(key)
        cos = jax.random.uniform(k1, (n, c), jnp.float32, minval=-0.99, maxval=0.99)
        lab = jax.random.randint(k2, (n,), 0, c, dtype=jnp.int32)
        return cos, lab

    # 1) multi-batch-tile path, full-C slab (N=20, tile_n=8 -> 3 tiles, padded rows)
    cos, lab = make_inputs(jax.random.PRNGKey(0), 20, 256)
    ref = _reference(cos, lab, RADIUS, COEFFS)
    out = jax.block_until_ready(
        rec_marginal_cos_loss(cos, lab, RADIUS, COEFFS, tile_n=8))
    assert jnp.allclose(out, ref, atol=1e-4, rtol=1e-4), (out, ref)

    # 2) forced large-C flash-LSE path (C=384, tile_c=128 -> 3 class tiles)
    cos, lab = make_inputs(jax.random.PRNGKey(1), 16, 384)
    ref = _reference(cos, lab, RADIUS, COEFFS)
    out = jax.block_until_ready(
        rec_marginal_cos_loss(cos, lab, RADIUS, COEFFS, tile_n=8, tile_c=128))
    assert jnp.allclose(out, ref, atol=1e-4, rtol=1e-4), (out, ref)

    # 3) large-C path with a ragged last class tile (C=300 -> column masking)
    cos, lab = make_inputs(jax.random.PRNGKey(2), 24, 300)
    ref = _reference(cos, lab, RADIUS, COEFFS)
    out = jax.block_until_ready(
        rec_marginal_cos_loss(cos, lab, RADIUS, COEFFS, tile_n=8, tile_c=128))
    assert jnp.allclose(out, ref, atol=1e-4, rtol=1e-4), (out, ref)

    # 4) coefficients that raise the target logit (exercises m_fin = r*marginal)
    cos, lab = make_inputs(jax.random.PRNGKey(3), 20, 256)
    coeffs_up = (1.0, -0.25, -0.1)
    ref = _reference(cos, lab, RADIUS, coeffs_up)
    out = jax.block_until_ready(
        rec_marginal_cos_loss(cos, lab, RADIUS, coeffs_up))
    assert jnp.allclose(out, ref, atol=1e-4, rtol=1e-4), (out, ref)

    # 5) bf16 streaming input (HBM-bandwidth win on v5e/v6e); reference computed
    #    on the same bf16-rounded values so tolerances stay tight.
    cos, lab = make_inputs(jax.random.PRNGKey(4), 20, 256)
    cos_bf16 = cos.astype(jnp.bfloat16)
    ref = _reference(cos_bf16.astype(jnp.float32), lab, RADIUS, COEFFS)
    out = jax.block_until_ready(
        rec_marginal_cos_loss(cos_bf16, lab, RADIUS, COEFFS))
    assert jnp.allclose(out, ref, atol=2e-3, rtol=2e-3), (out, ref)

    print("KERNEL_OK")
</pallas_src>

<mosaic_0001>
module attributes {stable_mosaic.version = 11 : i64} {
  func.func @_rec_loss_kernel(%arg0: i32, %arg1: i32, %arg2: memref<8x256xf32, #tpu.memory_space<vmem>>, %arg3: memref<8x1xi32, #tpu.memory_space<vmem>>, %arg4: memref<1x8x128xf32, #tpu.memory_space<vmem>>, %arg5: memref<8x1xf32, #tpu.memory_space<vmem>>, %arg6: memref<8x1xf32, #tpu.memory_space<vmem>>, %arg7: memref<8x1xf32, #tpu.memory_space<vmem>>) attributes {dimension_semantics = [#tpu.dimension_semantics<parallel>, #tpu.dimension_semantics<arbitrary>], iteration_bounds = array<i64: 3, 1>, scalar_prefetch = 0 : i64, scratch_operands = 3 : i64, tpu.core_type = #tpu.core_type<tc>, window_params = [{transform_indices = @transform_0, window_bounds = array<i64: 8, 256>}, {transform_indices = @transform_1, window_bounds = array<i64: 8, 1>}, {transform_indices = @transform_2, window_bounds = array<i64: 1, 8, 128>}]} {
    %c0_i32 = arith.constant 0 : i32
    %0 = arith.cmpi eq, %arg1, %c0_i32 : i32
    %1 = arith.extui %0 : i1 to i32
    %c0_i32_0 = arith.constant 0 : i32
    %2 = arith.cmpi ne, %1, %c0_i32_0 : i32
    scf.if %2 {
      %cst_22 = arith.constant -1.000000e+30 : f32
      %39 = vector.broadcast %cst_22 : f32 to vector<8x1xf32>
      %c0_23 = arith.constant 0 : index
      %c0_24 = arith.constant 0 : index
      %40 = vector.load %arg5[%c0_23, %c0_24] : memref<8x1xf32, #tpu.memory_space<vmem>>, vector<8x1xf32>
      tpu.vector_store %arg5[%c0_23, %c0_24], %39 {strides = array<i32>} : memref<8x1xf32, #tpu.memory_space<vmem>>, vector<8x1xf32>,
      %cst_25 = arith.constant 0.000000e+00 : f32
      %41 = vector.broadcast %cst_25 : f32 to vector<8x1xf32>
      %c0_26 = arith.constant 0 : index
      %c0_27 = arith.constant 0 : index
      %42 = vector.load %arg6[%c0_26, %c0_27] : memref<8x1xf32, #tpu.memory_space<vmem>>, vector<8x1xf32>
      tpu.vector_store %arg6[%c0_26, %c0_27], %41 {strides = array<i32>} : memref<8x1xf32, #tpu.memory_space<vmem>>, vector<8x1xf32>,
      %cst_28 = arith.constant -2.000000e+00 : f32
      %43 = vector.broadcast %cst_28 : f32 to vector<8x1xf32>
      %c0_29 = arith.constant 0 : index
      %c0_30 = arith.constant 0 : index
      %44 = vector.load %arg7[%c0_29, %c0_30] : memref<8x1xf32, #tpu.memory_space<vmem>>, vector<8x1xf32>
      tpu.vector_store %arg7[%c0_29, %c0_30], %43 {strides = array<i32>} : memref<8x1xf32, #tpu.memory_space<vmem>>, vector<8x1xf32>,
    } else {
    }
    %c0 = arith.constant 0 : index
    %c0_1 = arith.constant 0 : index
    %3 = vector.load %arg2[%c0, %c0_1] : memref<8x256xf32, #tpu.memory_space<vmem>>, vector<8x256xf32>
    %c0_2 = arith.constant 0 : index
    %c0_3 = arith.constant 0 : index
    %4 = vector.load %arg3[%c0_2, %c0_3] : memref<8x1xi32, #tpu.memory_space<vmem>>, vector<8x1xi32>
    %c256_i32 = arith.constant 256 : i32
    %5 = arith.muli %arg1, %c256_i32 : i32
    %6 = tpu.iota {dimensions = array<i32: 1>} : vector<8x256xi32>
    %7 = vector.broadcast %5 : i32 to vector<8x256xi32>
    %8 = arith.addi %7, %6 : vector<8x256xi32>
    %9 = vector.broadcast %4 : vector<8x1xi32> to vector<8x256xi32>
    %10 = arith.cmpi eq, %8, %9 : vector<8x256xi32>
    %c0_4 = arith.constant 0 : index
    %c0_5 = arith.constant 0 : index
    %11 = vector.load %arg7[%c0_4, %c0_5] : memref<8x1xf32, #tpu.memory_space<vmem>>, vector<8x1xf32>
    %cst = arith.constant -2.000000e+00 : f32
    %12 = vector.broadcast %cst : f32 to vector<8x256xf32>
    %13 = arith.select %10, %3, %12 : vector<8x256xi1>, vector<8x256xf32>
    %cst_6 = arith.constant dense<0xFF800000> : vector<8xf32>
    %14 = vector.multi_reduction <maximumf>, %13, %cst_6 [1] : vector<8x256xf32> to vector<8xf32>
    %15 = vector.shape_cast %14 : vector<8xf32> to vector<8x1xf32>
    %16 = arith.maximumf %11, %15 : vector<8x1xf32>
    %c0_7 = arith.constant 0 : index
    %c0_8 = arith.constant 0 : index
    %17 = vector.load %arg7[%c0_7, %c0_8] : memref<8x1xf32, #tpu.memory_space<vmem>>, vector<8x1xf32>
    tpu.vector_store %arg7[%c0_7, %c0_8], %16 {strides = array<i32>} : memref<8x1xf32, #tpu.memory_space<vmem>>, vector<8x1xf32>,
    %cst_9 = arith.constant 8.000000e+00 : f32
    %18 = vector.broadcast %cst_9 : f32 to vector<8x256xf32>
    %19 = arith.mulf %3, %18 : vector<8x256xf32>
    %c0_10 = arith.constant 0 : index
    %c0_11 = arith.constant 0 : index
    %20 = vector.load %arg5[%c0_10, %c0_11] : memref<8x1xf32, #tpu.memory_space<vmem>>, vector<8x1xf32>
    %cst_12 = arith.constant dense<0xFF800000> : vector<8xf32>
    %21 = vector.multi_reduction <maximumf>, %19, %cst_12 [1] : vector<8x256xf32> to vector<8xf32>
    %22 = vector.shape_cast %21 : vector<8xf32> to vector<8x1xf32>
    %23 = arith.maximumf %20, %22 : vector<8x1xf32>
    %c0_13 = arith.constant 0 : index
    %c0_14 = arith.constant 0 : index
    %24 = vector.load %arg6[%c0_13, %c0_14] : memref<8x1xf32, #tpu.memory_space<vmem>>, vector<8x1xf32>
    %25 = arith.subf %20, %23 : vector<8x1xf32>
    %26 = math.exp %25 : vector<8x1xf32>
    %27 = arith.mulf %24, %26 : vector<8x1xf32>
    %28 = vector.broadcast %23 : vector<8x1xf32> to vector<8x256xf32>
    %29 = arith.subf %19, %28 : vector<8x256xf32>
    %30 = math.exp %29 : vector<8x256xf32>
    %cst_15 = arith.constant dense<0.000000e+00> : vector<8xf32>
    %31 = vector.multi_reduction <add>, %30, %cst_15 [1] : vector<8x256xf32> to vector<8xf32>
    %32 = vector.shape_cast %31 : vector<8xf32> to vector<8x1xf32>
    %33 = arith.addf %27, %32 : vector<8x1xf32>
    %c0_16 = arith.constant 0 : index
    %c0_17 = arith.constant 0 : index
    %34 = vector.load %arg6[%c0_16, %c0_17] : memref<8x1xf32, #tpu.memory_space<vmem>>, vector<8x1xf32>
    tpu.vector_store %arg6[%c0_16, %c0_17], %33 {strides = array<i32>} : memref<8x1xf32, #tpu.memory_space<vmem>>, vector<8x1xf32>,
    %c0_18 = arith.constant 0 : index
    %c0_19 = arith.constant 0 : index
    %35 = vector.load %arg5[%c0_18, %c0_19] : memref<8x1xf32, #tpu.memory_space<vmem>>, vector<8x1xf32>
    tpu.vector_store %arg5[%c0_18, %c0_19], %23 {strides = array<i32>} : memref<8x1xf32, #tpu.memory_space<vmem>>, vector<8x1xf32>,
    %c0_i32_20 = arith.constant 0 : i32
    %36 = arith.cmpi eq, %arg1, %c0_i32_20 : i32
    %37 = arith.extui %36 : i1 to i32
    %c0_i32_21 = arith.constant 0 : i32
    %38 = arith.cmpi ne, %37, %c0_i32_21 : i32
    scf.if %38 {
      %c0_22 = arith.constant 0 : index
      %c0_23 = arith.constant 0 : index
      %39 = vector.load %arg7[%c0_22, %c0_23] : memref<8x1xf32, #tpu.memory_space<vmem>>, vector<8x1xf32>
      %cst_24 = arith.constant -1.000000e+00 : f32
      %cst_25 = arith.constant 1.000000e+00 : f32
      %40 = vector.broadcast %cst_24 : f32 to vector<8x1xf32>
      %41 = arith.maximumf %40, %39 : vector<8x1xf32>
      %42 = vector.broadcast %cst_25 : f32 to vector<8x1xf32>
      %43 = arith.minimumf %42, %41 : vector<8x1xf32>
      %44 = arith.mulf %43, %43 : vector<8x1xf32>
      %cst_26 = arith.constant 1.000000e+00 : f32
      %45 = vector.broadcast %cst_26 : f32 to vector<8x1xf32>
      %46 = arith.subf %45, %44 : vector<8x1xf32>
      %cst_27 = arith.constant 0.000000e+00 : f32
      %47 = vector.broadcast %cst_27 : f32 to vector<8x1xf32>
      %48 = arith.maximumf %46, %47 : vector<8x1xf32>
      %49 = math.sqrt %48 : vector<8x1xf32>
      %cst_28 = arith.constant 0.939372718 : f32
      %50 = vector.broadcast %cst_28 : f32 to vector<8x1xf32>
      %51 = arith.mulf %43, %50 : vector<8x1xf32>
      %cst_29 = arith.constant 0.342897803 : f32
      %52 = vector.broadcast %cst_29 : f32 to vector<8x1xf32>
      %53 = arith.mulf %49, %52 : vector<8x1xf32>
      %54 = arith.subf %51, %53 : vector<8x1xf32>
      %cst_30 = arith.constant 0.000000e+00 : f32
      %55 = vector.broadcast %cst_30 : f32 to vector<8x1xf32>
      %56 = arith.subf %54, %55 : vector<8x1xf32>
      %cst_31 = arith.constant 8.000000e+00 : f32
      %57 = vector.broadcast %cst_31 : f32 to vector<8x1xf32>
      %58 = arith.mulf %39, %57 : vector<8x1xf32>
      %cst_32 = arith.constant 8.000000e+00 : f32
      %59 = vector.broadcast %cst_32 : f32 to vector<8x1xf32>
      %60 = arith.mulf %56, %59 : vector<8x1xf32>
      %c0_33 = arith.constant 0 : index
      %c0_34 = arith.constant 0 : index
      %61 = vector.load %arg5[%c0_33, %c0_34] : memref<8x1xf32, #tpu.memory_space<vmem>>, vector<8x1xf32>
      %62 = arith.maximumf %61, %60 : vector<8x1xf32>
      %c0_35 = arith.constant 0 : index
      %c0_36 = arith.constant 0 : index
      %63 = vector.load %arg6[%c0_35, %c0_36] : memref<8x1xf32, #tpu.memory_space<vmem>>, vector<8x1xf32>
      %c0_37 = arith.constant 0 : index
      %c0_38 = arith.constant 0 : index
      %64 = vector.load %arg5[%c0_37, %c0_38] : memref<8x1xf32, #tpu.memory_space<vmem>>, vector<8x1xf32>
      %65 = arith.subf %64, %62 : vector<8x1xf32>
      %66 = math.exp %65 : vector<8x1xf32>
      %67 = arith.mulf %63, %66 : vector<8x1xf32>
      %68 = arith.subf %58, %62 : vector<8x1xf32>
      %69 = math.exp %68 : vector<8x1xf32>
      %70 = arith.subf %67, %69 : vector<8x1xf32>
      %71 = arith.subf %60, %62 : vector<8x1xf32>
      %72 = math.exp %71 : vector<8x1xf32>
      %73 = arith.addf %70, %72 : vector<8x1xf32>
      %cst_39 = arith.constant 1.000000e-30 : f32
      %74 = vector.broadcast %cst_39 : f32 to vector<8x1xf32>
      %75 = arith.maximumf %73, %74 : vector<8x1xf32>
      %76 = math.log %75 : vector<8x1xf32>
      %77 = arith.addf %76, %62 : vector<8x1xf32>
      %78 = arith.subf %77, %60 : vector<8x1xf32>
      %c8_i32 = arith.constant 8 : i32
      %79 = arith.muli %arg0, %c8_i32 : i32
      %80 = tpu.iota {dimensions = array<i32: 0>} : vector<8x1xi32>
      %81 = vector.broadcast %79 : i32 to vector<8x1xi32>
      %82 = arith.addi %81, %80 : vector<8x1xi32>
      %c20_i32 = arith.constant 20 : i32
      %83 = vector.broadcast %c20_i32 : i32 to vector<8x1xi32>
      %84 = arith.cmpi slt, %82, %83 : vector<8x1xi32>
      %cst_40 = arith.constant 0.000000e+00 : f32
      %85 = vector.broadcast %cst_40 : f32 to vector<8x1xf32>
      %86 = arith.select %84, %78, %85 : vector<8x1xi1>, vector<8x1xf32>
      %cst_41 = arith.constant dense<0.000000e+00> : vector<1xf32>
      %87 = vector.multi_reduction <add>, %86, %cst_41 [0] : vector<8x1xf32> to vector<1xf32>
      %88 = vector.shape_cast %87 : vector<1xf32> to vector<1x1xf32>
      %89 = vector.shape_cast %88 : vector<1x1xf32> to vector<1x1x1xf32>
      %90 = vector.shape_cast %89 : vector<1x1x1xf32> to vector<1x1x1xf32>
      %91 = vector.broadcast %90 : vector<1x1x1xf32> to vector<1x8x128xf32>
      %c0_42 = arith.constant 0 : index
      %c0_43 = arith.constant 0 : index
      %c0_44 = arith.constant 0 : index
      %92 = vector.load %arg4[%c0_42, %c0_43, %c0_44] : memref<1x8x128xf32, #tpu.memory_space<vmem>>, vector<1x8x128xf32>
      tpu.vector_store %arg4[%c0_42, %c0_43, %c0_44], %91 {strides = array<i32>} : memref<1x8x128xf32, #tpu.memory_space<vmem>>, vector<1x8x128xf32>,
    } else {
    }
    return
  }
  func.func @transform_0(%arg0: i32, %arg1: i32) -> (i32, i32) {
    %c0_i32 = arith.constant 0 : i32
    return %arg0, %arg1 : i32, i32
  }
  func.func @transform_1(%arg0: i32, %arg1: i32) -> (i32, i32) {
    %c0_i32 = arith.constant 0 : i32
    %c0_i32_0 = arith.constant 0 : i32
    return %arg0, %c0_i32 : i32, i32
  }
  func.func @transform_2(%arg0: i32, %arg1: i32) -> (i32, i32, i32) {
    %c0_i32 = arith.constant 0 : i32
    %c0_i32_0 = arith.constant 0 : i32
    %c0_i32_1 = arith.constant 0 : i32
    return %arg0, %c0_i32, %c0_i32_0 : i32, i32, i32
  }
}

</mosaic_0001>

<bundles_post_ra>
// kernel: tpu_custom_call.1
= control target key start
LH: loop header
LB: loop body
LE: loop exit
PB: predicated region body
PF: predicated region fallthrough
CT: control target
= control target key end

     0   :  { %7 = vsyncpa [#allocation6], 0  ;;  %s846_s0 = inlined_call_operand.hbm [shape: f32[20,256], index: 0, kind: input, shape index: {}]   ;;  %s847_s1 = inlined_call_operand.vmem [shape: s32[20,1], index: 1, kind: input, shape index: {}]   ;;  %s848_s2 = inlined_call_operand.hbm [shape: f32[3,8,128], index: 2, kind: output, shape index: {}]  }
   0x1   :  { %9 = vsyncpa [#allocation6 + $0x1], 0 }
   0x2   :  { %10 = vsyncpa [#allocation7], 0 }
   0x3   :  { %12 = vsyncpa [#allocation7 + $0x1], 0  ;;  %s660_s9 = smov 0   ;;  %s662_s10 = smov 0  }
   0x4   :  { %s664_s11 = smov 0   ;;  %s666_s12 = smov 0  }
   0x5   :  { %s668_s13 = smov 0   ;;  %s670_s14 = smov 0  }
   0x6 LB: > { %s423_s15 = sadd.s32 4294967295, %s637_s14   ;;  %s424_s16 = sadd.s32 4294967294, %s637_s14   ;;  %s637_s14 = sphi %s670_s14, %s18_s14   ;;  %s633_s13 = sphi %s668_s13, %s863_s13   ;;  %s629_s12 = sphi %s666_s12, %s862_s12   ;;  %s625_s11 = sphi %s664_s11, %s861_s11   ;;  %s621_s10 = sphi %s662_s10, %s860_s10   ;;  %s617_s9 = sphi %s660_s9, %s859_s9  }
   0x7   : > { %s30_s17 = sadd.s32 1, %s633_s13  ;;  %s39_s18 = sadd.s32 1, %s625_s11 }
   0x8   : > { %p32_p0 = scmp.ge.s32.totalorder %s30_s17, 3  ;;  %p46_p1 = scmp.ne.s32.totalorder %s625_s11, %s621_s10 }
   0x9   : > { %p47_p2 = scmp.eq.s32.totalorder %s637_s14, 0  ;;  %p52_p3 = scmp.ne.s32.totalorder %s621_s10, %s617_s9 }
   0xa   : > { %s865_s17 = smov (%p32_p0, %s30_s17), 0  ;;  %p53_p5 = scmp.eq.s32.totalorder %s423_s15, 0 }
   0xb   : > { %p701_p4 = por %p47_p2, %p46_p1  ;;  %s34_s20 = ssub.s32 %s633_s13, %s865_s17 }
   0xc   : > { %p102_p6 = scmp.eq.s32.totalorder %s423_s15, 2  ;;  %p37_p7 = scmp.eq.s32.totalorder %s34_s20, 0 }
   0xd   : > { %p707_p8 = por %p53_p5, %p52_p3  ;;  %p108_p10 = scmp.eq.s32.totalorder %s424_s16, 2 }
   0xe   : > { %p711_p9 = por %p102_p6, %p46_p1  ;;  %p453_p12 = scmp.lt.s32.totalorder %s637_s14, 3 }
   0xf   : > { %s716_s23 = scalar_select %p37_p7, %s625_s11, %s39_s18  }
  0x10   : > { %s852_s22 = scalar_select %p711_p9, 1, 0 }
  0x11   : > { %p718_p11 = por %p108_p10, %p52_p3  ;;  %s128_s25 = sand.u32 1, %s625_s11  }
  0x12   : > { %s427_s26 = sshll.u32 %s128_s25, 4  ;;  %s440_s27 = sshll.u32 %s633_s13, 8 }
  0x13   : > { %s853_s24 = scalar_select %p718_p11, 1, 0 }
  0x14   : > { %s728_s30 = scalar_lea.hbm %s846_s0, %s440_s27  ;;  %s132_s3 = scalar_lea.vmem [#allocation5], %s427_s26 }
  0x15   : > { %s142_s4 = sshll.u32 %s132_s3, 4  ;;  %p734_p13 = pnand %p453_p12, %p701_p4  ;;  %s730_s4 = int_to_ptr.vmem [resolvable:$true] %s142_s4 }
  0x16   : > { %s129_s6 = scalar_lea.sflag [#allocation6], %s128_s25  ;;  %s525_s7 = scalar_lea.hbm %s728_s30, 256 }
  0x17   : > { %p526_p2 = scmp.ne.s32.totalorder %s728_s30, %s525_s7  ;;  %p527_p3 = pneg %p734_p13 }
  0x18   : > { %s530_s16 = scalar_lea.hbm %s846_s0, 768  ;;  %p531_p4 = scmp.lt.u32.totalorder %s728_s30, %s846_s0 }
  0x19   : > { %p528_p5 = pnand %p527_p3, %p526_p2  ;;  %p532_p7 = scmp.lt.u32.totalorder %s530_s16, %s525_s7 }
  0x1a   : > { %p534_p12 = scmp.lt.u32.totalorder %s525_s7, %s728_s30 }
  0x1b   : > { %p529_p6 = pneg %p528_p5  ;;  %p533_p10 = por %p532_p7, %p531_p4 }
  0x1d   : > { %p535_p0 = por %p534_p12, %p533_p10 }
  0x1f   : > { %p536_p1 = pnand %p535_p0, %p529_p6 }
  0x21   : > { %539 = shalt.err (!%p536_p1)
}
  0x22   : > { %s540_s20 = scalar_lea.vmem %s730_s4, 256  ;;  %s639_s25 = smov [#allocation5]  }
  0x23   : > { %p541_p2 = scmp.ne.s32.totalorder %s730_s4, %s540_s20  ;;  %s545_s26 = sshll.u32 %s639_s25, 4  ;;  %s546_s26 = int_to_ptr.vmem [resolvable:$false] %s545_s26 }
  0x24   : > { %s547_s27 = scalar_lea.vmem %s546_s26, 512  ;;  %p548_p9 = scmp.lt.s32.totalorder %s730_s4, %s546_s26 }
  0x25   : > { %p543_p5 = pnand %p541_p2, %p527_p3  ;;  %p549_p4 = scmp.lt.s32.totalorder %s547_s27, %s540_s20 }
  0x27   : > { %p544_p11 = pneg %p543_p5  ;;  %p550_p7 = por %p549_p4, %p548_p9 }
  0x29   : > { %p551_p10 = pnand %p550_p7, %p544_p11 }
  0x2b   : > { %554 = shalt.err (!%p551_p10)
}
  0x2c   : > { %448 = dma.hbm_to_vmem [thread:$0]  (!%p734_p13), %s728_s30, 256, %s730_s4, %s129_s6  }
  0x2d   : > { %p855_p0 = scmp.lt.s32.totalorder %s637_s14, 4  ;;  %p856_p1 = scmp.ge.s32.totalorder %s637_s14, 1 }
  0x2f   : > { %p155_p3 = pnand %p856_p1, %p855_p0 }
  0x30   : > { %s770_s28 = sand.u32 (!%p155_p3), 1, %s621_s10  }
  0x31   : > { %158 = sbr.rel (%p155_p3) target bundleno = 686 (0x2ae), region = 28  ;;  %s431_s29 = sshll.u32 (!%p155_p3), %s770_s28, 4 }
  0x32   : > { %s161_s3 = scalar_lea.sflag (!%p155_p3), [#allocation6], %s770_s28  ;;  %s164_s7 = scalar_lea.vmem (!%p155_p3), [#allocation5], %s431_s29 }
  0x38   : > { %608 = dma.done.wait (%p707_p8), %s161_s3, 256  }
  0x39   : > { %610 = vsyncadd (%p707_p8), %s161_s3, 4294967040  ;;  %vm198_vm0 = vcmask 7168   ;;  %v640_v0 = vmov 0   ;;  %v641_v1 = vmov -1e+30   ;;  %v202_v2 = vld [vmem:[%s164_s7] sm:$0xff]  ;;  %v206_v13 = vlaneseq }
  0x3a   : > { %507 = vset.pattern.permute.xlu0 %v640_v0  ;;  %199 = vst.msk [vmem:[#allocation2] sm:$0xff] %vm198_vm0, %v641_v1  ;;  %508 = vset.pattern.permute.xlu1 %v640_v0  ;;  %v203_v3 = vld [vmem:[%s164_s7 + $0x8] sm:$0xff]  ;;  %v226_v4 = vmul.f32 8.0, %v202_v2  ;;  %p190_p9 = scmp.lt.s32.totalorder %s629_s12, 2  ;;  %v642_v8 = vmov 0.0   ;;  %v643_v15 = vmov -2.0  }
  0x3b   : > { %v227_v5 = vmul.f32 8.0, %v203_v3  ;;  %200 = vst.msk [vmem:[#allocation3] sm:$0xff] %vm198_vm0, %v642_v8  ;;  %v207_v14 = vand.u32 127, %v206_v13  ;;  %201 = vst.msk [vmem:[#allocation4] sm:$0xff] %vm198_vm0, %v643_v15  ;;  %s435_s8 = sshll.u32 %s629_s12, 3  ;;  %s432_s15 = sshll.u32 %s770_s28, 3 }
  0x3c   : > { %s191_s30 = scalar_select %p190_p9, %s629_s12, 2 }
  0x3d   : > { %v229_v6 = vmax.f32 %v226_v4, %v227_v5  ;;  %v208_v16 = vadd.s32 128, %v207_v14  ;;  %s188_s16 = scalar_lea.vmem [#allocation8], %s432_s15  ;;  %s437_s19 = sshll.u32 %s629_s12, 7 }
  0x3e   : > { %s433_s4 = sshll.u32 %s191_s30, 3  ;;  %s330_s18 = sshll.u32 %s188_s16, 4  ;;  %s795_s18 = int_to_ptr.vmem [resolvable:$true] %s330_s18 }
  0x3f   : > { %230 = vmax.xlane.f32.xlu0 %v229_v6  ;;  %s193_s6 = scalar_lea.vmem %s847_s1, %s433_s4  ;;  %v299_v6 = vstv %s435_s8  ;;  %s800_s26 = scalar_lea.hbm %s848_s2, %s437_s19 }
  0x40   : > { %v204_v7 = vld [vmem:[%s193_s6] sm:$0xff]  ;;  %s317_s27 = scalar_lea.sflag [#allocation7], %s770_s28  ;;  %s555_s29 = scalar_lea.vmem %s795_s18, 128 }
  0x41   : > { %v228_v9 = vld [vmem:[#allocation2] sm:$0xff]  ;;  %p556_p8 = scmp.ne.s32.totalorder %s795_s18, %s555_s29  ;;  %p857_p11 = scmp.ne.s32.totalorder %s852_s22, 0 }
  0x42   : > { %v217_v29 = vld [vmem:[#allocation4] sm:$0xff]  ;;  %v233_v53 = vld [vmem:[#allocation3] sm:$0xff]  ;;  %s644_s3 = smov [#allocation8]  }
  0x43   : > { %p557_p13 = pnand %p556_p8, %p857_p11  ;;  %s559_s12 = sshll.u32 %s644_s3, 4  ;;  %s560_s12 = int_to_ptr.vmem [resolvable:$false] %s559_s12 }
  0x44   : > { %s561_s7 = scalar_lea.vmem %s560_s12, 256  ;;  %p562_p12 = scmp.lt.s32.totalorder %s795_s18, %s560_s12 }
  0x45   : > { %p558_p6 = pneg %p557_p13  ;;  %p563_p2 = scmp.lt.s32.totalorder %s561_s7, %s555_s29 }
  0x47   : > { %p564_p5 = por %p563_p2, %p562_p12 }
  0x49   : > { %p565_p4 = pnand %p564_p5, %p558_p6 }
  0x55   : > { %213 = vperm.xlu0 %507, %v204_v7  }
  0xcc   : > { %v231_v10 = vpop.xlane.xlu0 %230 }
  0xcd   : > { %v232_v11 = vmax.f32 %v228_v9, %v231_v10 }
  0xcf   : > { %v234_v12 = vsub.f32 %v228_v9, %v232_v11  ;;  %254 = vst.msk [vmem:[#allocation2] sm:$0xff] %vm198_vm0, %v232_v11  ;;  %240 = vperm.xlu1 %508, %v232_v11  }
  0xd1   : > { %v235_v45 = vmul.f32 1.442695, %v234_v12 }
  0xd4   : > { %v214_v17 = vpop.permute.xlu0 %213 }
  0xd5   : > { %vm215_vm1 = vcmp.eq.s32.totalorder %v207_v14, %v214_v17  ;;  %vm216_vm2 = vcmp.eq.s32.totalorder %v208_v16, %v214_v17 }
  0xd6   : > { %v218_v18 = vsel %vm215_vm1, %v202_v2, -2.0  ;;  %v219_v19 = vsel %vm216_vm2, %v203_v3, -2.0  ;;  %v276_v47 = vld [vmem:[#allocation2] sm:$0xff] }
  0xd7   : > { %v220_v20 = vmax.f32 %v218_v18, %v219_v19 }
  0xf3   : > { %221 = vmax.xlane.f32.xlu1 %v220_v20 }
 0x14e   : > { %v241_v21 = vpop.permute.xlu1 %240 }
 0x14f   : > { %v243_v22 = vsub.f32 %v226_v4, %v241_v21  ;;  %v244_v23 = vsub.f32 %v227_v5, %v241_v21  ;;  %v298_v5 = vshrl.u32 %v206_v13, 7 }
 0x151   : > { %v245_v24 = vmul.f32 1.442695, %v243_v22  ;;  %v247_v25 = vmul.f32 1.442695, %v244_v23  ;;  %v300_v8 = vadd.s32 %v299_v6, %v298_v5 }
 0x153   : > { %509 = vpow2.f32 %v245_v24  ;;  %vm301_vm5 = vcmp.lt.s32.totalorder %v300_v8, 20 }
 0x154   : > { %511 = vpow2.f32 %v247_v25 }
 0x15d   : > { %v510_v26 = vpop.eup %509 }
 0x15e   : > { %v512_v27 = vpop.eup %511 }
 0x15f   : > { %v249_v28 = vadd.f32 %v512_v27, %v510_v26 }
 0x161   : > { %250 = vadd.xlane.f32.xlu1 %v249_v28 }
 0x180   : > { %v222_v30 = vpop.xlane.xlu1 %221 }
 0x181   : > { %v223_v31 = vmax.f32 %v217_v29, %v222_v30 }
 0x183   : > { %225 = vst.msk [vmem:[#allocation4] sm:$0xff] %vm198_vm0, %v223_v31 }
 0x18a   : > { %v258_v32 = vld [vmem:[#allocation4] sm:$0xff] }
 0x18b   : > { %v434_v33 = vclamps-f32 %v258_v32, 1.0  ;;  %v274_v49 = vmul.f32 8.0, %v258_v32 }
 0x18d   : > { %v261_v34 = vmul.f32 %v434_v33, %v434_v33  ;;  %v271_v42 = vmul.f32 0.9393727, %v434_v33 }
 0x18f   : > { %v262_v35 = vsub.f32 1.0, %v261_v34 }
 0x191   : > { %v263_v36 = vmax.f32 %v262_v35, 0.0 }
 0x193   : > { %513 = vrsqrt.f32 %v263_v36  ;;  %vm266_vm3 = vcmp.eq.f32.partialorder %v263_v36, inf  ;;  %v269_v39 = vand.u32 2147483648, %v263_v36  ;;  %vm268_vm4 = vcmp.eq.f32.partialorder %v263_v36, 0.0 }
 0x194   : > { %515 = vpow2.f32 %v235_v45 }
 0x19d   : > { %v514_v37 = vpop.eup %513 }
 0x19e   : > { %v265_v38 = vmul.f32 %v514_v37, %v263_v36  ;;  %v516_v52 = vpop.eup %515 }
 0x19f   : > { %v237_v57 = vmul.f32 %v516_v52, %v233_v53 }
 0x1a0   : > { %v267_v40 = vsel %vm266_vm3, %v263_v36, %v265_v38 }
 0x1a1   : > { %v270_v41 = vsel %vm268_vm4, %v269_v39, %v267_v40 }
 0x1a2   : > { %v272_v43 = vmul.f32 0.3428978, %v270_v41 }
 0x1a4   : > { %v273_v44 = vsub.f32 %v271_v42, %v272_v43 }
 0x1a6   : > { %v275_v46 = vmul.f32 8.0, %v273_v44 }
 0x1a8   : > { %v277_v48 = vmax.f32 %v276_v47, %v275_v46 }
 0x1aa   : > { %v279_v50 = vsub.f32 %v276_v47, %v277_v48  ;;  %v283_v51 = vsub.f32 %v274_v49, %v277_v48  ;;  %v287_v55 = vsub.f32 %v275_v46, %v277_v48 }
 0x1ac   : > { %v280_v54 = vmul.f32 1.442695, %v279_v50  ;;  %v284_v56 = vmul.f32 1.442695, %v283_v51  ;;  %v288_v59 = vmul.f32 1.442695, %v287_v55 }
 0x1ae   : > { %517 = vpow2.f32 %v280_v54 }
 0x1af   : > { %519 = vpow2.f32 %v284_v56 }
 0x1b0   : > { %521 = vpow2.f32 %v288_v59 }
 0x1b8   : > { %v518_v61 = vpop.eup %517 }
 0x1b9   : > { %v520_v0 = vpop.eup %519 }
 0x1ba   : > { %v522_v2 = vpop.eup %521 }
 0x1ee   : > { %v251_v58 = vpop.xlane.xlu1 %250 }
 0x1ef   : > { %v252_v60 = vadd.f32 %v251_v58, %v237_v57 }
 0x1f1   : > { %253 = vst.msk [vmem:[#allocation3] sm:$0xff] %vm198_vm0, %v252_v60 }
 0x1f8   : > { %v278_v62 = vld [vmem:[#allocation3] sm:$0xff] }
 0x1f9   : > { %v282_v63 = vmul.f32 %v518_v61, %v278_v62 }
 0x1fb   : > { %v286_v1 = vsub.f32 %v282_v63, %v520_v0 }
 0x1fd   : > { %v290_v3 = vadd.f32 %v522_v2, %v286_v1 }
 0x1ff   : > { %v291_v4 = vmax.f32 %v290_v3, 1e-30 }
 0x201   : > { %523 = vlog2.f32 %v291_v4 }
 0x20b   : > { %v524_v7 = vpop.eup %523 }
 0x20c   : > { %v293_v9 = vmul.f32 0.6931472, %v524_v7 }
 0x20e   : > { %v294_v10 = vadd.f32 %v293_v9, %v277_v48 }
 0x210   : > { %v295_v11 = vsub.f32 %v294_v10, %v275_v46 }
 0x212   : > { %v302_v12 = vsel %vm301_vm5, %v295_v11, 0.0 }
 0x213   : > { %v303_v14 = vsel %vm198_vm0, %v302_v12, 0.0 }
 0x214   : > { %v304_v15 = vrot.slane %v303_v14, 4 }
 0x216   : > { %v305_v16 = vadd.f32 %v304_v15, %v303_v14 }
 0x218   : > { %v306_v17 = vrot.slane %v305_v16, 2 }
 0x21a   : > { %v307_v18 = vadd.f32 %v306_v17, %v305_v16 }
 0x21c   : > { %v308_v19 = vrot.slane %v307_v18, 1 }
 0x21e   : > { %v309_v13 = vadd.f32 %v308_v19, %v307_v18 }
 0x220   : > { %312 = vperm.xlu1 %508, %v309_v13  }
 0x29f   : > { %v313_v20 = vpop.permute.xlu1 %312 }
 0x2a0   : > { %315 = vst [vmem:[%s188_s16] sm:$0xff] %v313_v20 }
 0x2a1   : > { %568 = shalt.err (!%p565_p4)
}
 0x2a2   : > { %s569_s28 = scalar_lea.hbm %s800_s26, 128  ;;  %s573_s21 = scalar_lea.hbm %s848_s2, 384 }
 0x2a3   : > { %p570_p7 = scmp.ne.s32.totalorder %s800_s26, %s569_s28  ;;  %p574_p1 = scmp.lt.u32.totalorder %s800_s26, %s848_s2 }
 0x2a4   : > { %p575_p3 = scmp.lt.u32.totalorder %s573_s21, %s569_s28  ;;  %p577_p8 = scmp.lt.u32.totalorder %s569_s28, %s800_s26 }
 0x2a5   : > { %p571_p10 = pnand %p570_p7, %p857_p11 }
 0x2a6   : > { %p576_p9 = por %p575_p3, %p574_p1 }
 0x2a7   : > { %p572_p0 = pneg %p571_p10 }
 0x2a8   : > { %p578_p13 = por %p577_p8, %p576_p9 }
 0x2aa   : > { %p579_p6 = pnand %p578_p13, %p572_p0 }
 0x2ac   : > { %582 = shalt.err (!%p579_p6)
}
 0x2ad   : > { %443 = dma.vmem_to_hbm [thread:$0]  (%p857_p11), %s795_s18, 128, %s800_s26, %s317_s27  }
 0x2ae PF: > { %p454_p12 = scmp.ge.s32.totalorder %s637_s14, 2  ;;  %s342_s8 = sand.u32 1, %s617_s9  }
 0x2af   : > { %p858_p2 = scmp.ne.s32.totalorder %s853_s24, 0  ;;  %s343_s15 = scalar_lea.sflag [#allocation7], %s342_s8 }
 0x2b1   : > { %p450_p5 = pnand %p454_p12, %p858_p2 }
 0x2b3   : > { %612 = dma.done.wait (!%p450_p5), %s343_s15, 128  }
 0x2b4   : > { %614 = vsyncadd (!%p450_p5), %s343_s15, 4294967168  ;;  %s18_s14 = sadd.s32 1, %s637_s14   ;;  %s859_s9 = smov %s621_s10 }
 0x2b5   : > { %p15_p4 = scmp.ge.s32.totalorder %s18_s14, 5   ;;  %s860_s10 = smov %s625_s11 }
 0x2b6   : > { %s861_s11 = smov %s716_s23  ;;  %s862_s12 = smov %s633_s13 }
 0x2b7   : > { %s863_s13 = smov %s865_s17  ;;  %17 = sbr.rel (!%p15_p4) target bundleno = 6 (0x6), region = 84 }
 0x2be   :  { %348 = vsyncpa [#allocation6], 1 }
 0x2bf   :  { %350 = vsyncpa [#allocation6 + $0x1], 1 }
 0x2c0   :  { %351 = vsyncpa [#allocation7], 1 }
 0x2c1   :  { %353 = vsyncpa [#allocation7 + $0x1], 1 }

</bundles_post_ra>
